<compile_context>
chip_gen: v6e
topology: v6e:2x2x1
jax: 0.10.0
libtpu: 0.0.40
codegen_flags: <defaults>
</compile_context>

<pallas_src>
import functools

import jax
import jax.numpy as jnp
from jax.experimental import pallas as pl
from jax.experimental.pallas import tpu as pltpu


def _vae_loss_kernel(orig_ref, recon_ref, mean_ref, logvar_ref,
                     loss_ref, rec_ref, kl_ref, acc_ref,
                     *, alpha, n_total, batch, tile_n, n_valid, needs_mask):
    i = pl.program_id(0)

    # Zero the f32 partial-sum accumulator on the first step.
    @pl.when(i == 0)
    def _init():
        acc_ref[...] = jnp.zeros_like(acc_ref)

    # Hot loop: upcast the streamed tiles to f32 and accumulate squared diffs.
    o = orig_ref[...].astype(jnp.float32)
    r = recon_ref[...].astype(jnp.float32)
    d = r - o
    sq = d * d
    if needs_mask:
        # Last block may extend past N; zero out the out-of-bounds columns.
        col = i * tile_n + jax.lax.broadcasted_iota(jnp.int32, sq.shape, 1)
        sq = jnp.where(col < n_valid, sq, 0.0)
    acc_ref[...] += sq

    # Epilogue: single cross-lane reduce + KL term, only on the final step.
    @pl.when(i == pl.num_programs(0) - 1)
    def _finalize():
        sq_sum = jnp.sum(acc_ref[...])
        rec_loss = 0.5 * sq_sum * (1.0 / float(n_total))

        mu = mean_ref[...].astype(jnp.float32)
        lv = logvar_ref[...].astype(jnp.float32)
        kl_sum = jnp.sum(1.0 + lv - mu * mu - jnp.exp(lv))
        kl_loss = -0.5 * kl_sum * (1.0 / float(batch))

        loss_ref[0, 0] = rec_loss + alpha * kl_loss
        rec_ref[0, 0] = rec_loss
        kl_ref[0, 0] = kl_loss


def vae_loss(original, reconstruction, mean, log_var, *, alpha=0.001,
             tile_n=2048):
    """Pallas implementation of VAELoss.forward.

    original / reconstruction: (B, ...)  any trailing layout (flattened per-batch)
    mean / log_var:            (B, latent_dim)
    Returns (loss, reconstruction_loss, kl_loss) as f32 scalars.
    """
    B = original.shape[0]
    # Reshapes are free (no copy); keep NATIVE dtype — upcast happens in-kernel.
    orig2d = original.reshape(B, -1)
    recon2d = reconstruction.reshape(B, -1)
    mean2d = mean.reshape(B, -1)
    logvar2d = log_var.reshape(B, -1)

    N = orig2d.shape[1]
    L = mean2d.shape[1]
    n_total = B * N

    # Tile the feature dimension; lane dim must be a multiple of 128 (or == N).
    tile_n = max(128, (int(tile_n) // 128) * 128)
    if N <= tile_n:
        tn = N
    else:
        tn = tile_n
    grid_n = pl.cdiv(N, tn)
    needs_mask = (N % tn) != 0

    # VMEM budget: 2 streamed inputs x 2 buffers x (B, tn) + f32 accumulator
    # + resident latents.  Cap at 32 MiB so it is safe on v7x (64 MiB physical).
    in_bytes = jnp.dtype(orig2d.dtype).itemsize
    est = (2 * 2 * B * tn * in_bytes) + (B * tn * 4) + (2 * B * L * 4) + (1 << 20)
    vmem_limit = int(min(max(2 * est, 8 << 20), 32 << 20))

    kernel = functools.partial(
        _vae_loss_kernel,
        alpha=float(alpha), n_total=n_total, batch=B,
        tile_n=tn, n_valid=N, needs_mask=needs_mask)

    loss, rec, kl = pl.pallas_call(
        kernel,
        grid=(grid_n,),
        out_shape=(
            jax.ShapeDtypeStruct((1, 1), jnp.float32),
            jax.ShapeDtypeStruct((1, 1), jnp.float32),
            jax.ShapeDtypeStruct((1, 1), jnp.float32),
        ),
        in_specs=[
            pl.BlockSpec((B, tn), lambda i: (0, i)),    # original   (streamed)
            pl.BlockSpec((B, tn), lambda i: (0, i)),    # reconstruction
            pl.BlockSpec((B, L), lambda i: (0, 0)),     # mean       (resident)
            pl.BlockSpec((B, L), lambda i: (0, 0)),     # log_var    (resident)
        ],
        out_specs=(
            pl.BlockSpec(memory_space=pltpu.MemorySpace.SMEM),
            pl.BlockSpec(memory_space=pltpu.MemorySpace.SMEM),
            pl.BlockSpec(memory_space=pltpu.MemorySpace.SMEM),
        ),
        scratch_shapes=[pltpu.VMEM((B, tn), jnp.float32)],
        compiler_params=pltpu.CompilerParams(
            dimension_semantics=("arbitrary",),
            vmem_limit_bytes=vmem_limit),
    )(orig2d, recon2d, mean2d, logvar2d)

    # TODO(synk): on v7x a leading "parallel" grid axis of size 2 (one per
    # TensorCore) with per-core partial sums would roughly double throughput.
    return loss[0, 0], rec[0, 0], kl[0, 0]


def _vae_loss_ref(original, reconstruction, mean, log_var, *, alpha=0.001):
    """Pure-JAX reference mirroring the PyTorch module."""
    rec = 0.5 * jnp.mean((reconstruction - original) ** 2)
    kl = -0.5 * jnp.sum(1.0 + log_var - mean ** 2 - jnp.exp(log_var)) / original.shape[0]
    return rec + alpha * kl, rec, kl


if __name__ == "__main__":
    key = jax.random.PRNGKey(0)
    k1, k2, k3, k4 = jax.random.split(key, 4)

    B, C, H, W = 2, 4, 16, 16
    latent = 32

    original = jax.random.normal(k1, (B, C, H, W), dtype=jnp.float32)
    reconstruction = jax.random.normal(k2, (B, C, H, W), dtype=jnp.float32)
    mean = jax.random.normal(k3, (B, latent), dtype=jnp.float32)
    log_var = 0.1 * jax.random.normal(k4, (B, latent), dtype=jnp.float32)

    ref = _vae_loss_ref(original, reconstruction, mean, log_var, alpha=0.001)

    # 1) default tile (single grid step for this small shape)
    out = jax.block_until_ready(
        vae_loss(original, reconstruction, mean, log_var, alpha=0.001))
    for a, b in zip(out, ref):
        assert jnp.allclose(a, b, rtol=1e-5, atol=1e-5), (a, b)

    # 2) multi-step grid with a ragged last tile (exercises the mask path)
    out2 = jax.block_until_ready(
        vae_loss(original, reconstruction, mean, log_var, alpha=0.001,
                 tile_n=384))
    for a, b in zip(out2, ref):
        assert jnp.allclose(a, b, rtol=1e-5, atol=1e-5), (a, b)

    # 3) native bf16 inputs streamed directly (no wrapper upcast)
    ob = original.astype(jnp.bfloat16)
    rb = reconstruction.astype(jnp.bfloat16)
    mb = mean.astype(jnp.bfloat16)
    lb = log_var.astype(jnp.bfloat16)
    out3 = jax.block_until_ready(vae_loss(ob, rb, mb, lb, alpha=0.001))
    ref3 = _vae_loss_ref(ob.astype(jnp.float32), rb.astype(jnp.float32),
                         mb.astype(jnp.float32), lb.astype(jnp.float32),
                         alpha=0.001)
    for a, b in zip(out3, ref3):
        assert jnp.allclose(a, b, rtol=1e-2, atol=1e-2), (a, b)

    print("KERNEL_OK")
</pallas_src>

<mosaic_0001>
module attributes {stable_mosaic.version = 11 : i64} {
  func.func @_vae_loss_kernel(%arg0: i32, %arg1: memref<2x1024xf32, #tpu.memory_space<vmem>>, %arg2: memref<2x1024xf32, #tpu.memory_space<vmem>>, %arg3: memref<2x32xf32, #tpu.memory_space<vmem>>, %arg4: memref<2x32xf32, #tpu.memory_space<vmem>>, %arg5: memref<1x1xf32, #tpu.memory_space<smem>>, %arg6: memref<1x1xf32, #tpu.memory_space<smem>>, %arg7: memref<1x1xf32, #tpu.memory_space<smem>>, %arg8: memref<2x1024xf32, #tpu.memory_space<vmem>>) attributes {dimension_semantics = [#tpu.dimension_semantics<arbitrary>], iteration_bounds = array<i64: 1>, scalar_prefetch = 0 : i64, scratch_operands = 1 : i64, tpu.core_type = #tpu.core_type<tc>, window_params = [{transform_indices = @transform_0, window_bounds = array<i64: 2, 1024>}, {transform_indices = @transform_1, window_bounds = array<i64: 2, 1024>}, {pipeline_mode = #tpu.pipeline_mode<synchronous>, transform_indices = @transform_2, window_bounds = array<i64: 2, 32>}, {pipeline_mode = #tpu.pipeline_mode<synchronous>, transform_indices = @transform_3, window_bounds = array<i64: 2, 32>}, {transform_indices = @transform_4, window_bounds = array<i64: 1, 1>}, {transform_indices = @transform_5, window_bounds = array<i64: 1, 1>}, {transform_indices = @transform_6, window_bounds = array<i64: 1, 1>}]} {
    %c0_i32 = arith.constant 0 : i32
    %0 = arith.cmpi eq, %arg0, %c0_i32 : i32
    %1 = arith.extui %0 : i1 to i32
    %c0_i32_0 = arith.constant 0 : i32
    %2 = arith.cmpi ne, %1, %c0_i32_0 : i32
    scf.if %2 {
      %cst = arith.constant 0.000000e+00 : f32
      %13 = vector.broadcast %cst : f32 to vector<2x1024xf32>
      %c0_10 = arith.constant 0 : index
      %c0_11 = arith.constant 0 : index
      %14 = vector.load %arg8[%c0_10, %c0_11] : memref<2x1024xf32, #tpu.memory_space<vmem>>, vector<2x1024xf32>
      tpu.vector_store %arg8[%c0_10, %c0_11], %13 {strides = array<i32>} : memref<2x1024xf32, #tpu.memory_space<vmem>>, vector<2x1024xf32>,
    } else {
    }
    %c0 = arith.constant 0 : index
    %c0_1 = arith.constant 0 : index
    %3 = vector.load %arg1[%c0, %c0_1] : memref<2x1024xf32, #tpu.memory_space<vmem>>, vector<2x1024xf32>
    %c0_2 = arith.constant 0 : index
    %c0_3 = arith.constant 0 : index
    %4 = vector.load %arg2[%c0_2, %c0_3] : memref<2x1024xf32, #tpu.memory_space<vmem>>, vector<2x1024xf32>
    %5 = arith.subf %4, %3 : vector<2x1024xf32>
    %6 = arith.mulf %5, %5 : vector<2x1024xf32>
    %c0_4 = arith.constant 0 : index
    %c0_5 = arith.constant 0 : index
    %7 = vector.load %arg8[%c0_4, %c0_5] : memref<2x1024xf32, #tpu.memory_space<vmem>>, vector<2x1024xf32>
    %8 = arith.addf %7, %6 : vector<2x1024xf32>
    %c0_6 = arith.constant 0 : index
    %c0_7 = arith.constant 0 : index
    %9 = vector.load %arg8[%c0_6, %c0_7] : memref<2x1024xf32, #tpu.memory_space<vmem>>, vector<2x1024xf32>
    tpu.vector_store %arg8[%c0_6, %c0_7], %8 {strides = array<i32>} : memref<2x1024xf32, #tpu.memory_space<vmem>>, vector<2x1024xf32>,
    %c0_i32_8 = arith.constant 0 : i32
    %10 = arith.cmpi eq, %arg0, %c0_i32_8 : i32
    %11 = arith.extui %10 : i1 to i32
    %c0_i32_9 = arith.constant 0 : i32
    %12 = arith.cmpi ne, %11, %c0_i32_9 : i32
    scf.if %12 {
      %c0_10 = arith.constant 0 : index
      %c0_11 = arith.constant 0 : index
      %13 = vector.load %arg8[%c0_10, %c0_11] : memref<2x1024xf32, #tpu.memory_space<vmem>>, vector<2x1024xf32>
      %14 = vector.shape_cast %13 : vector<2x1024xf32> to vector<1x2x1024xf32>
      %cst = arith.constant dense<0.000000e+00> : vector<1xf32>
      %15 = vector.multi_reduction <add>, %14, %cst [1, 2] : vector<1x2x1024xf32> to vector<1xf32>
      %16 = vector.shape_cast %15 : vector<1xf32> to vector<1x1x1xf32>
      %17 = vector.extract %16[0, 0, 0] : f32 from vector<1x1x1xf32>
      %cst_12 = arith.constant 5.000000e-01 : f32
      %18 = arith.mulf %cst_12, %17 : f32
      %cst_13 = arith.constant 4.8828125E-4 : f32
      %19 = arith.mulf %18, %cst_13 : f32
      %c0_14 = arith.constant 0 : index
      %c0_15 = arith.constant 0 : index
      %20 = vector.load %arg3[%c0_14, %c0_15] : memref<2x32xf32, #tpu.memory_space<vmem>>, vector<2x32xf32>
      %c0_16 = arith.constant 0 : index
      %c0_17 = arith.constant 0 : index
      %21 = vector.load %arg4[%c0_16, %c0_17] : memref<2x32xf32, #tpu.memory_space<vmem>>, vector<2x32xf32>
      %cst_18 = arith.constant 1.000000e+00 : f32
      %22 = vector.broadcast %cst_18 : f32 to vector<2x32xf32>
      %23 = arith.addf %22, %21 : vector<2x32xf32>
      %24 = arith.mulf %20, %20 : vector<2x32xf32>
      %25 = arith.subf %23, %24 : vector<2x32xf32>
      %26 = math.exp %21 : vector<2x32xf32>
      %27 = arith.subf %25, %26 : vector<2x32xf32>
      %28 = vector.shape_cast %27 : vector<2x32xf32> to vector<1x2x32xf32>
      %cst_19 = arith.constant dense<0.000000e+00> : vector<1xf32>
      %29 = vector.multi_reduction <add>, %28, %cst_19 [1, 2] : vector<1x2x32xf32> to vector<1xf32>
      %30 = vector.shape_cast %29 : vector<1xf32> to vector<1x1x1xf32>
      %31 = vector.extract %30[0, 0, 0] : f32 from vector<1x1x1xf32>
      %cst_20 = arith.constant -5.000000e-01 : f32
      %32 = arith.mulf %cst_20, %31 : f32
      %cst_21 = arith.constant 5.000000e-01 : f32
      %33 = arith.mulf %32, %cst_21 : f32
      %cst_22 = arith.constant 1.000000e-03 : f32
      %34 = arith.mulf %cst_22, %33 : f32
      %35 = arith.addf %19, %34 : f32
      %c0_23 = arith.constant 0 : index
      %c0_24 = arith.constant 0 : index
      %36 = memref.load %arg5[%c0_23, %c0_24] : memref<1x1xf32, #tpu.memory_space<smem>>
      memref.store %35, %arg5[%c0_23, %c0_24] : memref<1x1xf32, #tpu.memory_space<smem>>
      %c0_25 = arith.constant 0 : index
      %c0_26 = arith.constant 0 : index
      %37 = memref.load %arg6[%c0_25, %c0_26] : memref<1x1xf32, #tpu.memory_space<smem>>
      memref.store %19, %arg6[%c0_25, %c0_26] : memref<1x1xf32, #tpu.memory_space<smem>>
      %c0_27 = arith.constant 0 : index
      %c0_28 = arith.constant 0 : index
      %38 = memref.load %arg7[%c0_27, %c0_28] : memref<1x1xf32, #tpu.memory_space<smem>>
      memref.store %33, %arg7[%c0_27, %c0_28] : memref<1x1xf32, #tpu.memory_space<smem>>
    } else {
    }
    return
  }
  func.func @transform_0(%arg0: i32) -> (i32, i32) {
    %c0_i32 = arith.constant 0 : i32
    %c0_i32_0 = arith.constant 0 : i32
    return %c0_i32, %arg0 : i32, i32
  }
  func.func @transform_1(%arg0: i32) -> (i32, i32) {
    %c0_i32 = arith.constant 0 : i32
    %c0_i32_0 = arith.constant 0 : i32
    return %c0_i32, %arg0 : i32, i32
  }
  func.func @transform_2(%arg0: i32) -> (i32, i32) {
    %c0_i32 = arith.constant 0 : i32
    %c0_i32_0 = arith.constant 0 : i32
    %c0_i32_1 = arith.constant 0 : i32
    return %c0_i32, %c0_i32_0 : i32, i32
  }
  func.func @transform_3(%arg0: i32) -> (i32, i32) {
    %c0_i32 = arith.constant 0 : i32
    %c0_i32_0 = arith.constant 0 : i32
    %c0_i32_1 = arith.constant 0 : i32
    return %c0_i32, %c0_i32_0 : i32, i32
  }
  func.func @transform_4(%arg0: i32) -> (i32, i32) {
    %c0_i32 = arith.constant 0 : i32
    %c0_i32_0 = arith.constant 0 : i32
    %c0_i32_1 = arith.constant 0 : i32
    return %c0_i32, %c0_i32_0 : i32, i32
  }
  func.func @transform_5(%arg0: i32) -> (i32, i32) {
    %c0_i32 = arith.constant 0 : i32
    %c0_i32_0 = arith.constant 0 : i32
    %c0_i32_1 = arith.constant 0 : i32
    return %c0_i32, %c0_i32_0 : i32, i32
  }
  func.func @transform_6(%arg0: i32) -> (i32, i32) {
    %c0_i32 = arith.constant 0 : i32
    %c0_i32_0 = arith.constant 0 : i32
    %c0_i32_1 = arith.constant 0 : i32
    return %c0_i32, %c0_i32_0 : i32, i32
  }
}

</mosaic_0001>

<bundles_post_ra>
// kernel: tpu_custom_call.1
= control target key start
LH: loop header
LB: loop body
LE: loop exit
PB: predicated region body
PF: predicated region fallthrough
CT: control target
= control target key end

     0   :  { %12 = vsyncpa [#allocation4], 0  ;;  %s363_s0 = inlined_call_operand.hbm [shape: f32[2,1024], index: 0, kind: input, shape index: {}]   ;;  %s364_s1 = inlined_call_operand.hbm [shape: f32[2,1024], index: 1, kind: input, shape index: {}]   ;;  %s365_s2 = inlined_call_operand.vmem [shape: f32[2,32], index: 2, kind: input, shape index: {}]   ;;  %s366_s3 = inlined_call_operand.vmem [shape: f32[2,32], index: 3, kind: input, shape index: {}]   ;;  %s367_s4 = inlined_call_operand.hbm [shape: f32[1,1], index: 4, kind: output, shape index: {0}]   ;;  %s368_s5 = inlined_call_operand.hbm [shape: f32[1,1], index: 5, kind: output, shape index: {1}]   ;;  %s369_s6 = inlined_call_operand.hbm [shape: f32[1,1], index: 6, kind: output, shape index: {2}]  }
   0x1   :  { %13 = vsyncpa [#allocation7], 0 }
   0x2   :  { %14 = vsyncpa [#allocation5], 0 }
   0x3   :  { %15 = vsyncpa [#allocation10], 0  ;;  %s293_s21 = smov [#allocation3]   ;;  %s294_s23 = smov [#allocation6]  }
   0x4   :  { %s22_s22 = sshll.u32 %s293_s21, 4  ;;  %s32_s24 = sshll.u32 %s294_s23, 4  ;;  %s23_s22 = int_to_ptr.vmem [resolvable:$true] %s22_s22  ;;  %s33_s24 = int_to_ptr.vmem [resolvable:$true] %s32_s24 }
   0x5   :  { %s229_s25 = scalar_lea.vmem %s23_s22, 256  ;;  %p234_p1 = scmp.lt.s32.totalorder %s23_s22, %s23_s22 }
   0x6   :  { %p230_p0 = scmp.ne.s32.totalorder %s23_s22, %s229_s25  ;;  %p235_p2 = scmp.lt.s32.totalorder %s229_s25, %s229_s25 }
   0x8   :  { %p236_p3 = por %p235_p2, %p234_p1 }
   0xa   :  { %p237_p4 = pnand %p236_p3, %p230_p0 }
   0xc   :  { %240 = shalt.err (!%p237_p4)
}
   0xd   :  { %25 = dma.hbm_to_vmem [thread:$0]  %s363_s0, 256, %s23_s22, [#allocation4]  }
   0xe   :  { %s249_s28 = scalar_lea.vmem %s33_s24, 256  ;;  %p254_p6 = scmp.lt.s32.totalorder %s33_s24, %s33_s24 }
   0xf   :  { %p250_p5 = scmp.ne.s32.totalorder %s33_s24, %s249_s28  ;;  %p255_p7 = scmp.lt.s32.totalorder %s249_s28, %s249_s28 }
  0x11   :  { %p256_p8 = por %p255_p7, %p254_p6 }
  0x13   :  { %p257_p9 = pnand %p256_p8, %p250_p5 }
  0x15   :  { %260 = shalt.err (!%p257_p9)
}
  0x16   :  { %35 = dma.hbm_to_vmem [thread:$0]  %s364_s1, 256, %s33_s24, [#allocation7]  }
  0x17   :  { %285 = dma.done.wait [#allocation4], 256  }
  0x18   :  { %286 = vsyncadd [#allocation4], 4294967040 }
  0x19   :  { %287 = dma.done.wait [#allocation7], 256  }
  0x1a   :  { %288 = vsyncadd [#allocation7], 4294967040  ;;  %v77_v0 = vlaneseq  ;;  %v295_v1 = vmov 1983009808   ;;  %v52_v5 = vld [vmem:[#allocation3] sm:$0xff]  ;;  %v53_v6 = vld [vmem:[#allocation3 + $0x8] sm:$0xff] }
  0x1b   :  { %v75_v2 = vunpack.c.l.s4 %v295_v1  ;;  %v54_v7 = vld [vmem:[#allocation6] sm:$0xff]  ;;  %v55_v8 = vld [vmem:[#allocation6 + $0x8] sm:$0xff]  ;;  %v143_v11 = vld [vmem:[%s366_s3] sm:$0x3]  ;;  %vm115_vm0 = vcmask 1041408   ;;  %vm150_vm1 = vcmask 254976  }
  0x1c   :  { %v78_v4 = vshrl.u32 %v77_v0, 7  ;;  %v56_v9 = vsub.f32 %v54_v7, %v52_v5  ;;  %v57_v12 = vsub.f32 %v55_v8, %v53_v6  ;;  %v147_v13 = vmul.f32 1.442695, %v143_v11  ;;  %v142_v27 = vld [vmem:[%s365_s2] sm:$0x3]  ;;  %s296_s12 = smov [#allocation9]  }
  0x1d   :  { %v76_v3 = vunpack.c.0.s8 %v75_v2  ;;  %v144_v33 = vadd.f32 1.0, %v143_v11  ;;  %v145_v34 = vmul.f32 %v142_v27, %v142_v27  ;;  %s297_s17 = smov [#allocation11]   ;;  %s298_s21 = smov [#allocation8]  }
  0x1e   :  { %v58_v14 = vmul.f32 %v56_v9, %v56_v9  ;;  %v59_v15 = vmul.f32 %v57_v12, %v57_v12  ;;  %219 = vpow2.f32 %v147_v13 }
  0x1f   :  { %v79_v10 = vsub.s32 %v76_v3, %v78_v4  ;;  %v146_v40 = vsub.f32 %v144_v33, %v145_v34 }
  0x20   :  { %v73_v16 = vcombine.high %v58_v14, %v58_v14  ;;  %v90_v18 = vcombine.high %v59_v15, %v59_v15 }
  0x21   :  { %v80_v17 = vrot.slane %v58_v14, %v79_v10  ;;  %v97_v21 = vrot.slane %v59_v15, %v79_v10 }
  0x22   :  { %v87_v19 = vrot.slane %v73_v16, %v79_v10  ;;  %v104_v28 = vrot.slane %v90_v18, %v79_v10 }
  0x23   :  { %v88_v20 = vcombine.high %v80_v17, %v80_v17  ;;  %v116_v22 = vsel %vm115_vm0, %v80_v17, 0.0  ;;  %v105_v29 = vcombine.high %v97_v21, %v97_v21  ;;  %v123_v32 = vsel %vm115_vm0, %v97_v21, 0.0 }
  0x24   :  { %v89_v23 = vcombine.high %v87_v19, %v87_v19  ;;  %v119_v25 = vsel %vm115_vm0, %v87_v19, 0.0  ;;  %v106_v36 = vcombine.high %v104_v28, %v104_v28  ;;  %v127_v39 = vsel %vm115_vm0, %v104_v28, 0.0 }
  0x25   :  { %v117_v24 = vsel %vm115_vm0, %v88_v20, 0.0  ;;  %v125_v37 = vsel %vm115_vm0, %v105_v29, 0.0 }
  0x26   :  { %v118_v26 = vadd.f32 %v117_v24, %v116_v22  ;;  %v121_v30 = vsel %vm115_vm0, %v89_v23, 0.0  ;;  %v129_v43 = vsel %vm115_vm0, %v106_v36, 0.0 }
  0x28   :  { %v120_v31 = vadd.f32 %v119_v25, %v118_v26 }
  0x2a   :  { %v122_v35 = vadd.f32 %v121_v30, %v120_v31 }
  0x2b   :  { %v220_v41 = vpop.eup %219 }
  0x2c   :  { %v124_v38 = vadd.f32 %v123_v32, %v122_v35  ;;  %v149_v45 = vsub.f32 %v146_v40, %v220_v41 }
  0x2e   :  { %v126_v42 = vadd.f32 %v125_v37, %v124_v38  ;;  %v151_v47 = vsel %vm150_vm1, %v149_v45, 0.0 }
  0x30   :  { %v128_v44 = vadd.f32 %v127_v39, %v126_v42 }
  0x32   :  { %v130_v46 = vadd.f32 %v129_v43, %v128_v44 }
  0x34   :  { %131 = vadd.xlane.f32.xlu0 %v130_v46 }
  0x38   :  { %152 = vadd.xlane.f32.xlu0 %v151_v47 }
  0xbd   :  { %v132_v48 = vpop.xlane.xlu0 %131 }
  0xbe   :  { %v133_v49 = vrot.slane %v132_v48, 4 }
  0xc0   :  { %v134_v50 = vadd.f32 %v133_v49, %v132_v48 }
  0xc1   :  { %v153_v51 = vpop.xlane.xlu0 %152 }
  0xc2   :  { %v135_v52 = vrot.slane %v134_v50, 2  ;;  %v154_v53 = vrot.slane %v153_v51, 4 }
  0xc4   :  { %v155_v54 = vadd.f32 %v154_v53, %v153_v51  ;;  %v136_v55 = vadd.f32 %v135_v52, %v134_v50 }
  0xc6   :  { %v156_v56 = vrot.slane %v155_v54, 2  ;;  %v137_v57 = vrot.slane %v136_v55, 1 }
  0xc8   :  { %v157_v58 = vadd.f32 %v156_v56, %v155_v54  ;;  %v138_v59 = vadd.f32 %v137_v57, %v136_v55 }
  0xca   :  { %209 = vpush %v138_v59  ;;  %v158_v60 = vrot.slane %v157_v58, 1 }
  0xcc   :  { %v159_v61 = vadd.f32 %v158_v60, %v157_v58 }
  0xce   :  { %211 = vpush %v159_v61 }
  0xfb   :  { %s210_s2 = spop %209 }
  0xfc   :  { %s140_s8 = smul.f32 0.5, %s210_s2 }
  0xfe   :  { %s141_s9 = smul.f32 0.00048828125, %s140_s8 }
  0xff   :  { %s212_s10 = spop %211 }
 0x100   :  { %s161_s11 = smul.f32 -0.5, %s212_s10  ;;  %168 = sst [smem:[#allocation9]] %s141_s9 }
 0x101   :  { %186 = dma.smem_to_hbm %s296_s12, 16, %s368_s5, [#allocation10]  }
 0x102   :  { %s162_s15 = smul.f32 0.5, %s161_s11 }
 0x104   :  { %s163_s16 = smul.f32 0.001, %s162_s15  ;;  %170 = sst [smem:[#allocation11]] %s162_s15 }
 0x105   :  { %194 = dma.smem_to_hbm %s297_s17, 16, %s369_s6, [#allocation10]  }
 0x106   :  { %s164_s20 = sadd.f32 %s163_s16, %s141_s9 }
 0x108   :  { %166 = sst [smem:[#allocation8]] %s164_s20 }
 0x109   :  { %178 = dma.smem_to_hbm %s298_s21, 16, %s367_s4, [#allocation5]  }
 0x10a   :  { %289 = dma.done.wait [#allocation5], 16  }
 0x10b   :  { %290 = vsyncadd [#allocation5], 4294967280 }
 0x10c   :  { %291 = dma.done.wait [#allocation10], 32  }
 0x10d   :  { %292 = vsyncadd [#allocation10], 4294967264 }
 0x10e   :  { %204 = sfence }
 0x10f   :  { %205 = vsyncpa [#allocation4], 1 }
 0x110   :  { %206 = vsyncpa [#allocation7], 1 }
 0x111   :  { %207 = vsyncpa [#allocation5], 1 }
 0x112   :  { %208 = vsyncpa [#allocation10], 1 }

</bundles_post_ra>
